<compile_context>
chip_gen: v7x
topology: tpu7x:2x2x1
jax: 0.10.0
libtpu: 0.0.40
codegen_flags: <defaults>
</compile_context>

<pallas_src>
import functools

import jax
import jax.numpy as jnp
from jax import lax
from jax.experimental import pallas as pl
from jax.experimental.pallas import tpu as pltpu


def _cdiv(a, b):
    return (a + b - 1) // b


def _round_up(x, m):
    return _cdiv(x, m) * m


def _make_partial_sum_kernel(row_tile, hw_tile, hw, n_col_blocks, unroll=4):
    """Per (row_tile, hw_tile) block: per-row 128-lane partial sums of pred+gt."""
    n_chunks = hw_tile // 128
    # Valid lane count inside the LAST column block; lanes past it hold
    # uninitialised VMEM and must not be accumulated.
    rem = hw - (n_col_blocks - 1) * hw_tile
    ragged = rem != hw_tile
    n_chunks_last = _cdiv(rem, 128)

    def _accumulate(pred_ref, gt_ref, n, masked):
        def body(k, acc):
            start = pl.multiple_of(k * 128, 128)
            v = (pred_ref[:, pl.ds(start, 128)].astype(jnp.float32)
                 + gt_ref[:, pl.ds(start, 128)].astype(jnp.float32))
            if masked:
                lane = lax.broadcasted_iota(jnp.int32, (row_tile, 128), 1) + k * 128
                v = jnp.where(lane < rem, v, 0.0)
            return acc + v

        init = jnp.zeros((row_tile, 128), jnp.float32)
        return lax.fori_loop(0, n, body, init, unroll=min(unroll, n))

    def kernel(pred_ref, gt_ref, out_ref):
        if not ragged:
            out_ref[...] = _accumulate(pred_ref, gt_ref, n_chunks, False)
        else:
            j = pl.program_id(1)

            @pl.when(j != n_col_blocks - 1)
            def _():
                out_ref[...] = _accumulate(pred_ref, gt_ref, n_chunks, False)

            @pl.when(j == n_col_blocks - 1)
            def _():
                out_ref[...] = _accumulate(pred_ref, gt_ref, n_chunks_last, True)

    return kernel


def _vs_finalize(s, B, C):
    """VSsToVS over the batch + average of channels 1..4, as in the module."""
    s = s.reshape(B, C)
    abs_s = jnp.abs(s)                       # |pred.sum + GT.sum| per (b, c)
    # diff[i,c] = |s| and summ[i,c] = s, and VSsToVS takes |.| of both before the
    # batch sum, so the numerator and denominator reductions coincide (computed once).
    # TODO(synk): module as written uses `+` in diff(); if `-` (volume difference)
    # was intended, the numerator becomes sum_i |pred.sum() - GT.sum()| instead.
    chan = jnp.sum(abs_s, axis=0)            # (C,)
    vs = 1.0 - (2.0 * chan + 1e-8) / (chan + 1e-8)
    return jnp.mean(vs[1:5])                 # average VSB, VSW, VST, VSZ


@functools.partial(jax.jit, static_argnames=("force_pallas",))
def compute_vs_onehot(pred, gt, *, force_pallas=False):
    assert pred.shape == gt.shape and pred.ndim == 4
    B, C, H, W = pred.shape
    rows, hw = B * C, H * W

    # Tiny / narrow inputs: pallas_call launch + per-step overhead dominates,
    # and hw < 128 cannot form a lane-dense tile -> plain jnp is faster.
    if hw < 128 or (not force_pallas and rows * hw < (1 << 20)):
        s = (jnp.sum(pred.astype(jnp.float32).reshape(rows, hw), axis=-1)
             + jnp.sum(gt.astype(jnp.float32).reshape(rows, hw), axis=-1))
        return _vs_finalize(s, B, C)

    # ---- tile selection: NO padding of the inputs ---------------------------
    # rows: sublane-dense (multiple of 8) unless rows itself is < 8.
    row_tile = rows if rows < 8 else min(64, (rows // 8) * 8)
    # hw: lane-dense (multiple of 128), capped at 8192 lanes (2 MiB/f32 tile).
    hw_tile = min(8192, (hw // 128) * 128)

    n_row_blocks = _cdiv(rows, row_tile)
    n_col_blocks = _cdiv(hw, hw_tile)

    # v7x shards "parallel" grid axes over 2 TensorCores: ensure >= 2 grid cells
    # whenever the input is wide enough to split.
    if n_row_blocks * n_col_blocks == 1 and hw >= 256:
        hw_tile = _round_up(_cdiv(hw, 2), 128)
        n_col_blocks = _cdiv(hw, hw_tile)

    p2 = pred.reshape(rows, hw)   # metadata reshape, no copy
    g2 = gt.reshape(rows, hw)

    kernel = _make_partial_sum_kernel(row_tile, hw_tile, hw, n_col_blocks)

    out_rows = n_row_blocks * row_tile
    out_cols = n_col_blocks * 128
    bytes_accessed = (p2.size * p2.dtype.itemsize
                      + g2.size * g2.dtype.itemsize
                      + out_rows * out_cols * 4)

    partials = pl.pallas_call(
        kernel,
        out_shape=jax.ShapeDtypeStruct((out_rows, out_cols), jnp.float32),
        grid_spec=pltpu.PrefetchScalarGridSpec(
            num_scalar_prefetch=0,
            grid=(n_row_blocks, n_col_blocks),
            in_specs=[
                pl.BlockSpec((row_tile, hw_tile), lambda i, j: (i, j)),
                pl.BlockSpec((row_tile, hw_tile), lambda i, j: (i, j)),
            ],
            out_specs=pl.BlockSpec((row_tile, 128), lambda i, j: (i, j)),
        ),
        compiler_params=pltpu.CompilerParams(
            dimension_semantics=("parallel", "parallel")),
        cost_estimate=pl.CostEstimate(
            flops=2 * rows * hw, transcendentals=0,
            bytes_accessed=int(bytes_accessed)),
    )(p2, g2)

    # O(B*C) finalize in plain JAX. Garbage rows from a ragged last row block are
    # dropped by the [:rows] slice (each row's partial sum is independent).
    s = jnp.sum(partials, axis=-1)[:rows]
    return _vs_finalize(s, B, C)


def reference_vs_onehot(pred, gt):
    # pure-JAX reference of the same (module-faithful) semantics
    p = pred.astype(jnp.float32)
    g = gt.astype(jnp.float32)
    s = jnp.sum(p, axis=(2, 3)) + jnp.sum(g, axis=(2, 3))   # (B, C)
    chan = jnp.sum(jnp.abs(s), axis=0)                       # (C,)
    vs = 1.0 - (2.0 * chan + 1e-8) / (chan + 1e-8)
    return jnp.mean(vs[1:5])


def _make_inputs(key, B, C, H, W):
    kp, kg = jax.random.split(key)
    pred = jax.nn.softmax(jax.random.normal(kp, (B, C, H, W), jnp.float32), axis=1)
    labels = jax.random.randint(kg, (B, H, W), 0, C)
    gt = jax.nn.one_hot(labels, C, axis=1, dtype=jnp.float32)
    return pred, gt


if __name__ == "__main__":
    key = jax.random.PRNGKey(0)
    # module hard-codes 5 channels (N, B, W, T, Z)
    cases = [
        (2, 5, 16, 16),   # exact tiling (hw=256), 2 row blocks
        (3, 5, 15, 15),   # ragged hw=225 -> masked last column block + ragged rows
        (2, 5, 48, 48),   # hw=2304 -> genuinely rolled fori_loop (18 lane chunks)
    ]
    for shape in cases:
        key, sub = jax.random.split(key)
        pred, gt = _make_inputs(sub, *shape)
        out = jax.block_until_ready(compute_vs_onehot(pred, gt, force_pallas=True))
        ref = jax.block_until_ready(reference_vs_onehot(pred, gt))
        assert jnp.allclose(out, ref, atol=1e-5, rtol=1e-5), (shape, out, ref)

    # small-input fallback path (plain jnp) must agree as well
    pred, gt = _make_inputs(jax.random.PRNGKey(1), 2, 5, 16, 16)
    out = jax.block_until_ready(compute_vs_onehot(pred, gt))
    ref = reference_vs_onehot(pred, gt)
    assert jnp.allclose(out, ref, atol=1e-5, rtol=1e-5), (out, ref)

    print("KERNEL_OK")
</pallas_src>

<mosaic_0001>
module attributes {stable_mosaic.version = 11 : i64} {
  func.func @kernel(%arg0: i32, %arg1: i32, %arg2: memref<8x256xf32, #tpu.memory_space<vmem>>, %arg3: memref<8x256xf32, #tpu.memory_space<vmem>>, %arg4: memref<8x128xf32, #tpu.memory_space<vmem>>) attributes {dimension_semantics = [#tpu.dimension_semantics<parallel>, #tpu.dimension_semantics<parallel>], iteration_bounds = array<i64: 2, 1>, scalar_prefetch = 0 : i64, scratch_operands = 0 : i64, tpu.core_type = #tpu.core_type<tc>, window_params = [{transform_indices = @transform_0, window_bounds = array<i64: 8, 256>}, {transform_indices = @transform_1, window_bounds = array<i64: 8, 256>}, {transform_indices = @transform_2, window_bounds = array<i64: 8, 128>}]} {
    %cst = arith.constant 0.000000e+00 : f32
    %0 = vector.broadcast %cst : f32 to vector<8x128xf32>
    %c0_i32 = arith.constant 0 : i32
    %c128_i32 = arith.constant 128 : i32
    %1 = arith.muli %c0_i32, %c128_i32 : i32
    %2 = tpu.assume_multiple %1, 128 : i32
    %c0 = arith.constant 0 : index
    %3 = arith.index_cast %2 : i32 to index
    %4 = vector.load %arg2[%c0, %3] : memref<8x256xf32, #tpu.memory_space<vmem>>, vector<8x128xf32>
    %c0_0 = arith.constant 0 : index
    %5 = arith.index_cast %2 : i32 to index
    %6 = vector.load %arg3[%c0_0, %5] : memref<8x256xf32, #tpu.memory_space<vmem>>, vector<8x128xf32>
    %7 = arith.addf %4, %6 : vector<8x128xf32>
    %8 = arith.addf %0, %7 : vector<8x128xf32>
    %c1_i32 = arith.constant 1 : i32
    %c128_i32_1 = arith.constant 128 : i32
    %9 = arith.muli %c1_i32, %c128_i32_1 : i32
    %10 = tpu.assume_multiple %9, 128 : i32
    %c0_2 = arith.constant 0 : index
    %11 = arith.index_cast %10 : i32 to index
    %12 = vector.load %arg2[%c0_2, %11] : memref<8x256xf32, #tpu.memory_space<vmem>>, vector<8x128xf32>
    %c0_3 = arith.constant 0 : index
    %13 = arith.index_cast %10 : i32 to index
    %14 = vector.load %arg3[%c0_3, %13] : memref<8x256xf32, #tpu.memory_space<vmem>>, vector<8x128xf32>
    %15 = arith.addf %12, %14 : vector<8x128xf32>
    %16 = arith.addf %8, %15 : vector<8x128xf32>
    %c2_i32 = arith.constant 2 : i32
    %c0_4 = arith.constant 0 : index
    %c0_5 = arith.constant 0 : index
    %17 = vector.load %arg4[%c0_4, %c0_5] : memref<8x128xf32, #tpu.memory_space<vmem>>, vector<8x128xf32>
    tpu.vector_store %arg4[%c0_4, %c0_5], %16 {strides = array<i32>} : memref<8x128xf32, #tpu.memory_space<vmem>>, vector<8x128xf32>,
    return
  }
  func.func @transform_0(%arg0: i32, %arg1: i32) -> (i32, i32) {
    %c0_i32 = arith.constant 0 : i32
    return %arg0, %arg1 : i32, i32
  }
  func.func @transform_1(%arg0: i32, %arg1: i32) -> (i32, i32) {
    %c0_i32 = arith.constant 0 : i32
    return %arg0, %arg1 : i32, i32
  }
  func.func @transform_2(%arg0: i32, %arg1: i32) -> (i32, i32) {
    %c0_i32 = arith.constant 0 : i32
    return %arg0, %arg1 : i32, i32
  }
}

</mosaic_0001>

<bundles_post_ra>
// kernel: compute_vs_onehot.1
= control target key start
LH: loop header
LB: loop body
LE: loop exit
PB: predicated region body
PF: predicated region fallthrough
CT: control target
= control target key end

     0   :  { %s399_s9 = smov 0   ;;  %s401_s10 = smov 0   ;;  %s423_s0 = inlined_call_operand.vmem [shape: f32[10,256], index: 0, kind: input, shape index: {}]   ;;  %s424_s1 = inlined_call_operand.vmem [shape: f32[10,256], index: 1, kind: input, shape index: {}]   ;;  %s425_s2 = inlined_call_operand.vmem [shape: f32[16,128], index: 2, kind: output, shape index: {}]  }
   0x1   :  { %s403_s11 = smov 0  }
   0x2 LB: > { %s24_s12 = sadd.s32 1, %s378_s10  ;;  %p324_p0 = scmp.ge.s32.totalorder %s382_s11, 1  ;;  %s382_s11 = sphi %s403_s11, %s12_s11   ;;  %s378_s10 = sphi %s401_s10, %s427_s10   ;;  %s374_s9 = sphi %s399_s9, %s426_s9  }
   0x3   : > { %p26_p1 = scmp.ge.s32.totalorder %s24_s12, 2  ;;  %p150_p2 = scmp.lt.s32.totalorder %s382_s11, 3 }
   0x5   : > { %s429_s12 = smov (%p26_p1, %s24_s12), 0  ;;  %p151_p3 = pnand %p324_p0, %p150_p2 }
   0x6   : > { %p188_p4 = scmp.lt.s32.totalorder (!%p151_p3), %s374_s9, 1 }
   0x7   : > { %154 = sbr.rel (%p151_p3) target bundleno = 24 (0x18), region = 28 }
   0xe   : > { %s431_s9 = smov (!%p188_p4, %s374_s9), 1 }
   0xf   : > { %s334_s13 = sshll.u32 %s431_s9, 4  ;;  %s329_s20 = sshll.u32 %s431_s9, 3 }
  0x10   : > { %s195_s16 = scalar_lea.vmem %s423_s0, %s334_s13  ;;  %s205_s19 = scalar_lea.vmem %s424_s1, %s334_s13 }
  0x11   : > { %v214_v0 = vld [vmem:[%s195_s16] sm:$0xff]  ;;  %v330_v2 = vld [vmem:[%s195_s16 + $0x8] sm:$0xff]  ;;  %s213_s23 = scalar_lea.vmem %s425_s2, %s329_s20 }
  0x12   : > { %v215_v1 = vld [vmem:[%s205_s19] sm:$0xff]  ;;  %v331_v4 = vld [vmem:[%s205_s19 + $0x8] sm:$0xff] }
  0x13   : > { %v216_v3 = vadd.f32 %v215_v1, %v214_v0  ;;  %v222_v5 = vadd.f32 %v331_v4, %v330_v2 }
  0x15   : > { %v223_v6 = vadd.f32 %v222_v5, %v216_v3 }
  0x17   : > { %224 = vst [vmem:[%s213_s23] sm:$0xff] %v223_v6 }
  0x18 PF: > { %s12_s11 = sadd.s32 1, %s382_s11   ;;  %s426_s9 = smov %s378_s10 }
  0x19   : > { %p9_p5 = scmp.ge.s32.totalorder %s12_s11, 4   ;;  %s427_s10 = smov %s429_s12 }
  0x1b   :  { %11 = sbr.rel (!%p9_p5) target bundleno = 2 (0x2), region = 63 }

</bundles_post_ra>
